<compile_context>
chip_gen: v6e
topology: v6e:2x2x1
jax: 0.10.0
libtpu: 0.0.40
codegen_flags: <defaults>
</compile_context>

<pallas_src>
import functools

import jax
import jax.numpy as jnp
from jax.experimental import pallas as pl
from jax.experimental.pallas import tpu as pltpu

LANE = 128
TILE_BYTES_BUDGET = 2 * 1024 * 1024   # per x_col buffer (safe for v7x 64 MiB VMEM)


def _round_up(n, m):
    return (n + m - 1) // m * m


def _pad_to(a, shape):
    return jnp.pad(a, [(0, t - s) for s, t in zip(a.shape, shape)])


# ----------------------------------------------------------------------------
# Fused, gridded kernel
# ----------------------------------------------------------------------------
def tc_ind_fused_kernel(xcol_ref, t_ref,
                        cw_ref, cb_ref,
                        pw1_ref, pb1_ref, pw2_ref, pb2_ref, pw3_ref,
                        tw1_ref, tb1_ref, tw2_ref,
                        o_ref, b12_acc, *, spt, hw):
    """TC_ind forward: backbone (conv-as-matmul + pool) per row tile, tail on last step.

    Grid axis 0 iterates over sample-aligned tiles of im2col rows (spt samples,
    spt*hw rows per tile). All feature dims are zero-padded to 128 lanes.

    xcol_ref: (spt*hw, KCP) im2col patch tile (compute dtype, pipelined)
    t_ref:    (B, 1)        time differences
    cw/cb:    conv weight (KCP, FP) / bias (1, FP)
    pw*/pb*:  projector weights / biases (padded)
    tw*/tb*:  temporal-predictor weights / biases (padded)
    o_ref:    (6B, FP) f32 packed output:
              rows [0,2B)=z1|z2  [2B,4B)=b1|b2  [4B,5B)=b_equi_pred  [5B,6B)=traj
    b12_acc:  (2B, FP) f32 VMEM scratch holding pooled backbone outputs
    """
    i = pl.program_id(0)
    batch = t_ref.shape[0]
    fp = o_ref.shape[1]
    inv_hw = 1.0 / hw

    # ---- backbone on this row tile: conv-as-matmul (MXU, f32 accumulation) + bias + ReLU
    h = jnp.dot(xcol_ref[...], cw_ref[...], preferred_element_type=jnp.float32)
    h = jnp.maximum(h + cb_ref[...].astype(jnp.float32), 0.0)

    # ---- in-kernel global average pool (sublane reduce; no pool matrix / MXU)
    pooled = jnp.concatenate(
        [jnp.sum(h[s * hw:(s + 1) * hw, :], axis=0, keepdims=True)
         for s in range(spt)],
        axis=0) * inv_hw                                           # (spt, fp) f32
    b12_acc[pl.ds(i * spt, spt), :] = pooled

    # ---- tail: temporal predictor + projector, only once all samples are pooled
    @pl.when(i == pl.num_programs(0) - 1)
    def _():
        dt = xcol_ref.dtype                       # compute dtype (bf16 or f32)
        b12 = b12_acc[...]                        # (2B, fp) f32 == [b1; b2]

        # temporal predictor: Linear(1 -> PH) is an outer product (VPU) + ReLU, then MXU
        ph = jnp.maximum(t_ref[...] * tw1_ref[...] + tb1_ref[...], 0.0)     # (B, fp)
        traj = jnp.dot(ph.astype(dt), tw2_ref[...],
                       preferred_element_type=jnp.float32)                  # (B, fp)

        # projector MLP on stacked [b1; b2]
        z = jnp.dot(b12.astype(dt), pw1_ref[...], preferred_element_type=jnp.float32)
        z = jnp.maximum(z + pb1_ref[...].astype(jnp.float32), 0.0)
        z = jnp.dot(z.astype(dt), pw2_ref[...], preferred_element_type=jnp.float32)
        z = jnp.maximum(z + pb2_ref[...].astype(jnp.float32), 0.0)
        z = jnp.dot(z.astype(dt), pw3_ref[...], preferred_element_type=jnp.float32)  # (2B, fp)

        # grouped, lane-dense stores (rows grouped per tensor)
        o_ref[pl.ds(0, 2 * batch), :] = z                     # z1 | z2
        o_ref[pl.ds(2 * batch, 2 * batch), :] = b12           # b1 | b2
        o_ref[pl.ds(4 * batch, 2 * batch), :] = jnp.concatenate(
            [b12[:batch] + traj, traj], axis=0)               # b_equi_pred | traj


# ----------------------------------------------------------------------------
# Wrapper (glue: transpose, im2col, padding, tile sizing, pallas_call)
# ----------------------------------------------------------------------------
@functools.partial(jax.jit, static_argnames=("compute_dtype",))
def tc_ind_forward(x1, x2, time_diff, params, compute_dtype=jnp.bfloat16):
    """Pallas implementation of TC_ind.forward (norm_embed=False, stop_gr=False)."""
    batch, chan, height, width = x1.shape
    hw = height * width

    rep = params["conv_w"].shape[-1]
    h1 = params["pw1"].shape[-1]
    h2 = params["pw2"].shape[-1]
    h3 = params["pw3"].shape[-1]
    ph = params["tw1"].shape[-1]
    fp = _round_up(max(rep, h1, h2, h3, ph), LANE)      # common padded feature dim
    kc = 9 * chan
    kcp = _round_up(kc, LANE)                           # padded im2col contraction

    cdt = jnp.dtype(compute_dtype)

    # glue: NCHW -> NHWC, stack both views along batch, im2col (3x3, pad=1)
    x = jnp.transpose(jnp.concatenate([x1, x2], axis=0), (0, 2, 3, 1))
    xp = jnp.pad(x, ((0, 0), (1, 1), (1, 1), (0, 0)))
    cols = [xp[:, dy:dy + height, dx:dx + width, :]
            for dy in range(3) for dx in range(3)]
    x_col = jnp.concatenate(cols, axis=-1).reshape(2 * batch * hw, kc)
    x_col = _pad_to(x_col, (2 * batch * hw, kcp)).astype(cdt)

    # lane-dense parameters in compute dtype (f32 accumulation on every dot)
    cw = _pad_to(params["conv_w"].reshape(kc, rep), (kcp, fp)).astype(cdt)
    cb = _pad_to(params["conv_b"].reshape(1, rep), (1, fp)).astype(cdt)
    pw1 = _pad_to(params["pw1"], (fp, fp)).astype(cdt)
    pb1 = _pad_to(params["pb1"].reshape(1, h1), (1, fp)).astype(cdt)
    pw2 = _pad_to(params["pw2"], (fp, fp)).astype(cdt)
    pb2 = _pad_to(params["pb2"].reshape(1, h2), (1, fp)).astype(cdt)
    pw3 = _pad_to(params["pw3"], (fp, fp)).astype(cdt)
    tw1 = _pad_to(params["tw1"], (1, fp)).astype(cdt)
    tb1 = _pad_to(params["tb1"].reshape(1, ph), (1, fp)).astype(cdt)
    tw2 = _pad_to(params["tw2"], (fp, fp)).astype(cdt)
    t = time_diff.astype(cdt)

    # ---- row-tile choice: sample-aligned, sized against ~2 MiB/buffer, capped at B
    #      samples so the grid pipeline is exercised even at small shapes.
    per_sample_bytes = hw * kcp * cdt.itemsize
    spt = max(1, min(batch, TILE_BYTES_BUDGET // per_sample_bytes))
    while (2 * batch) % spt:                 # spt must evenly tile the 2B samples
        spt -= 1
    if (spt * hw) % 8 != 0 and spt != 2 * batch:
        spt = 2 * batch                      # fall back to a single un-gridded tile
    num_tiles = (2 * batch) // spt
    rows_per_tile = spt * hw

    # explicit VMEM budget (default scoped limit is 32 MiB; v7x physical is 64 MiB)
    weight_bytes = (kcp * fp + 6 * fp * fp + 5 * fp) * cdt.itemsize
    est = (2 * rows_per_tile * kcp * cdt.itemsize      # double-buffered x_col tiles
           + 2 * weight_bytes                          # resident (conservatively x2) weights
           + 4 * rows_per_tile * fp * 4                # h / relu temporaries (f32)
           + 8 * batch * fp * 4 * 2)                   # pooled scratch + packed output
    vmem_limit = int(min(64 * 1024 * 1024, max(32 * 1024 * 1024, 2 * est)))

    kernel = functools.partial(tc_ind_fused_kernel, spt=spt, hw=hw)
    const = lambda i: (0, 0)

    out = pl.pallas_call(
        kernel,
        out_shape=jax.ShapeDtypeStruct((6 * batch, fp), jnp.float32),
        grid_spec=pltpu.PrefetchScalarGridSpec(
            num_scalar_prefetch=0,
            grid=(num_tiles,),
            in_specs=[
                pl.BlockSpec((rows_per_tile, kcp), lambda i: (i, 0)),  # x_col (pipelined)
                pl.BlockSpec((batch, 1), const),                       # time_diff
                pl.BlockSpec((kcp, fp), const),                        # conv w
                pl.BlockSpec((1, fp), const),                          # conv b
                pl.BlockSpec((fp, fp), const),                         # pw1
                pl.BlockSpec((1, fp), const),                          # pb1
                pl.BlockSpec((fp, fp), const),                         # pw2
                pl.BlockSpec((1, fp), const),                          # pb2
                pl.BlockSpec((fp, fp), const),                         # pw3
                pl.BlockSpec((1, fp), const),                          # tw1
                pl.BlockSpec((1, fp), const),                          # tb1
                pl.BlockSpec((fp, fp), const),                         # tw2
            ],
            out_specs=pl.BlockSpec((6 * batch, fp), const),
            scratch_shapes=[pltpu.VMEM((2 * batch, fp), jnp.float32)],
        ),
        compiler_params=pltpu.CompilerParams(
            dimension_semantics=("arbitrary",),   # tail depends on all row tiles
            vmem_limit_bytes=vmem_limit,
        ),
    )(x_col, t, cw, cb, pw1, pb1, pw2, pb2, pw3, tw1, tb1, tw2)

    z1 = out[0:batch, :h3]
    z2 = out[batch:2 * batch, :h3]
    b2 = out[3 * batch:4 * batch, :rep]
    b_equi_pred = out[4 * batch:5 * batch, :rep]
    traj = out[5 * batch:6 * batch, :rep]
    return z1, z2, b2, b_equi_pred, traj


# ----------------------------------------------------------------------------
# Pure-JAX reference (for correctness check)
# ----------------------------------------------------------------------------
def _ref_backbone(x_nchw, conv_w, conv_b):
    x = jnp.transpose(x_nchw, (0, 2, 3, 1))
    batch, height, width, chan = x.shape
    out_dim = conv_w.shape[-1]
    xp = jnp.pad(x, ((0, 0), (1, 1), (1, 1), (0, 0)))
    cols = [xp[:, dy:dy + height, dx:dx + width, :]
            for dy in range(3) for dx in range(3)]
    x_col = jnp.concatenate(cols, axis=-1).reshape(batch, height * width, 9 * chan)
    h = jnp.maximum(x_col @ conv_w.reshape(9 * chan, out_dim) + conv_b, 0.0)
    return jnp.mean(h, axis=1)


def _ref_forward(x1, x2, time_diff, p):
    b1 = _ref_backbone(x1, p["conv_w"], p["conv_b"])
    b2 = _ref_backbone(x2, p["conv_w"], p["conv_b"])
    traj = jnp.maximum(time_diff @ p["tw1"] + p["tb1"], 0.0) @ p["tw2"]
    b_equi_pred = b1 + traj

    def proj(v):
        h = jnp.maximum(v @ p["pw1"] + p["pb1"], 0.0)
        h = jnp.maximum(h @ p["pw2"] + p["pb2"], 0.0)
        return h @ p["pw3"]

    return proj(b1), proj(b2), b2, b_equi_pred, traj


# ----------------------------------------------------------------------------
# Main
# ----------------------------------------------------------------------------
if __name__ == "__main__":
    B, C, H, W = 2, 4, 16, 16
    REPRE = 32          # backbone representation dim (repre_dim)
    PROJ_H = (64, 64, 64)
    PRED_H = 64

    key = jax.random.PRNGKey(0)
    ks = jax.random.split(key, 10)

    x1 = jax.random.normal(ks[0], (B, C, H, W), jnp.float32)
    x2 = jax.random.normal(ks[1], (B, C, H, W), jnp.float32)
    time_diff = jax.random.normal(ks[2], (B, 1), jnp.float32)

    def lin_w(k, fan_in, fan_out):
        # _init_weights: normal(mean=0, std=0.01), bias = 0
        return 0.01 * jax.random.normal(k, (fan_in, fan_out), jnp.float32)

    params = {
        # backbone conv (not touched by _init_weights; deterministic synthetic init)
        "conv_w": 0.05 * jax.random.normal(ks[3], (3, 3, C, REPRE), jnp.float32),
        "conv_b": jnp.zeros((REPRE,), jnp.float32),
        # projector: bias on hidden layers, no bias on last (proj_bias_last=False)
        "pw1": lin_w(ks[4], REPRE, PROJ_H[0]), "pb1": jnp.zeros((PROJ_H[0],), jnp.float32),
        "pw2": lin_w(ks[5], PROJ_H[0], PROJ_H[1]), "pb2": jnp.zeros((PROJ_H[1],), jnp.float32),
        "pw3": lin_w(ks[6], PROJ_H[1], PROJ_H[2]),
        # tempPredictor: MLP(1, (PRED_H, REPRE)), bias=True, bias_last=False
        "tw1": lin_w(ks[7], 1, PRED_H), "tb1": jnp.zeros((PRED_H,), jnp.float32),
        "tw2": lin_w(ks[8], PRED_H, REPRE),
    }

    # f32 compute path: tight check against the pure-JAX reference
    outs_f32 = tc_ind_forward(x1, x2, time_diff, params, compute_dtype=jnp.float32)
    outs_f32 = jax.block_until_ready(outs_f32)

    # bf16 operand / f32 accumulation path (default): loosened check
    outs_bf16 = tc_ind_forward(x1, x2, time_diff, params)
    outs_bf16 = jax.block_until_ready(outs_bf16)

    refs = _ref_forward(x1, x2, time_diff, params)
    names = ("z1", "z2", "b2", "b_equi_pred", "traj")

    for name, got, want in zip(names, outs_f32, refs):
        assert got.shape == want.shape, (name, got.shape, want.shape)
        err = float(jnp.max(jnp.abs(got - want)))
        assert jnp.allclose(got, want, atol=1e-5, rtol=1e-5), (name, err)

    for name, got, want in zip(names, outs_bf16, refs):
        assert got.shape == want.shape, (name, got.shape, want.shape)
        err = float(jnp.max(jnp.abs(got - want)))
        assert jnp.allclose(got, want, atol=5e-3, rtol=5e-2), (name, err)

    print("KERNEL_OK")
</pallas_src>

<mosaic_0001>
module attributes {stable_mosaic.version = 11 : i64} {
  func.func @tc_ind_fused_kernel(%arg0: i32, %arg1: memref<512x128xf32, #tpu.memory_space<vmem>>, %arg2: memref<2x1xf32, #tpu.memory_space<vmem>>, %arg3: memref<128x128xf32, #tpu.memory_space<vmem>>, %arg4: memref<1x128xf32, #tpu.memory_space<vmem>>, %arg5: memref<128x128xf32, #tpu.memory_space<vmem>>, %arg6: memref<1x128xf32, #tpu.memory_space<vmem>>, %arg7: memref<128x128xf32, #tpu.memory_space<vmem>>, %arg8: memref<1x128xf32, #tpu.memory_space<vmem>>, %arg9: memref<128x128xf32, #tpu.memory_space<vmem>>, %arg10: memref<1x128xf32, #tpu.memory_space<vmem>>, %arg11: memref<1x128xf32, #tpu.memory_space<vmem>>, %arg12: memref<128x128xf32, #tpu.memory_space<vmem>>, %arg13: memref<12x128xf32, #tpu.memory_space<vmem>>, %arg14: memref<4x128xf32, #tpu.memory_space<vmem>>) attributes {dimension_semantics = [#tpu.dimension_semantics<arbitrary>], iteration_bounds = array<i64: 2>, scalar_prefetch = 0 : i64, scratch_operands = 1 : i64, tpu.core_type = #tpu.core_type<tc>, window_params = [{transform_indices = @transform_0, window_bounds = array<i64: 512, 128>}, {pipeline_mode = #tpu.pipeline_mode<synchronous>, transform_indices = @transform_1, window_bounds = array<i64: 2, 1>}, {pipeline_mode = #tpu.pipeline_mode<synchronous>, transform_indices = @transform_2, window_bounds = array<i64: 128, 128>}, {pipeline_mode = #tpu.pipeline_mode<synchronous>, transform_indices = @transform_3, window_bounds = array<i64: 1, 128>}, {pipeline_mode = #tpu.pipeline_mode<synchronous>, transform_indices = @transform_4, window_bounds = array<i64: 128, 128>}, {pipeline_mode = #tpu.pipeline_mode<synchronous>, transform_indices = @transform_5, window_bounds = array<i64: 1, 128>}, {pipeline_mode = #tpu.pipeline_mode<synchronous>, transform_indices = @transform_6, window_bounds = array<i64: 128, 128>}, {pipeline_mode = #tpu.pipeline_mode<synchronous>, transform_indices = @transform_7, window_bounds = array<i64: 1, 128>}, {pipeline_mode = #tpu.pipeline_mode<synchronous>, transform_indices = @transform_8, window_bounds = array<i64: 128, 128>}, {pipeline_mode = #tpu.pipeline_mode<synchronous>, transform_indices = @transform_9, window_bounds = array<i64: 1, 128>}, {pipeline_mode = #tpu.pipeline_mode<synchronous>, transform_indices = @transform_10, window_bounds = array<i64: 1, 128>}, {pipeline_mode = #tpu.pipeline_mode<synchronous>, transform_indices = @transform_11, window_bounds = array<i64: 128, 128>}, {pipeline_mode = #tpu.pipeline_mode<synchronous>, transform_indices = @transform_12, window_bounds = array<i64: 12, 128>}]} {
    %c0 = arith.constant 0 : index
    %c0_0 = arith.constant 0 : index
    %0 = vector.load %arg1[%c0, %c0_0] : memref<512x128xf32, #tpu.memory_space<vmem>>, vector<512x128xf32>
    %c0_1 = arith.constant 0 : index
    %c0_2 = arith.constant 0 : index
    %1 = vector.load %arg3[%c0_1, %c0_2] : memref<128x128xf32, #tpu.memory_space<vmem>>, vector<128x128xf32>
    %cst = arith.constant dense<0.000000e+00> : vector<512x128xf32>
    %2 = tpu.matmul %0, %1, %cst {dimension_numbers = #tpu.dot_dimension_numbers<[1], [0], [0], [1], [0, 0, 1, 1], [], []>} : vector<512x128xf32>, vector<128x128xf32>, vector<512x128xf32> -> vector<512x128xf32>
    %c0_3 = arith.constant 0 : index
    %c0_4 = arith.constant 0 : index
    %3 = vector.load %arg4[%c0_3, %c0_4] : memref<1x128xf32, #tpu.memory_space<vmem>>, vector<1x128xf32>
    %4 = vector.broadcast %3 : vector<1x128xf32> to vector<512x128xf32>
    %5 = arith.addf %2, %4 : vector<512x128xf32>
    %cst_5 = arith.constant 0.000000e+00 : f32
    %6 = vector.broadcast %cst_5 : f32 to vector<512x128xf32>
    %7 = arith.maximumf %5, %6 : vector<512x128xf32>
    %8 = vector.extract_strided_slice %7 {offsets = [0, 0], sizes = [256, 128], strides = [1, 1]} : vector<512x128xf32> to vector<256x128xf32>
    %cst_6 = arith.constant dense<0.000000e+00> : vector<128xf32>
    %9 = vector.multi_reduction <add>, %8, %cst_6 [0] : vector<256x128xf32> to vector<128xf32>
    %10 = vector.shape_cast %9 : vector<128xf32> to vector<1x128xf32>
    %11 = vector.extract_strided_slice %7 {offsets = [256, 0], sizes = [256, 128], strides = [1, 1]} : vector<512x128xf32> to vector<256x128xf32>
    %cst_7 = arith.constant dense<0.000000e+00> : vector<128xf32>
    %12 = vector.multi_reduction <add>, %11, %cst_7 [0] : vector<256x128xf32> to vector<128xf32>
    %13 = vector.shape_cast %12 : vector<128xf32> to vector<1x128xf32>
    %14 = tpu.concatenate %10, %13 in 0 : vector<1x128xf32>, vector<1x128xf32> -> vector<2x128xf32>
    %cst_8 = arith.constant 3.906250e-03 : f32
    %15 = vector.broadcast %cst_8 : f32 to vector<2x128xf32>
    %16 = arith.mulf %14, %15 : vector<2x128xf32>
    %c2_i32 = arith.constant 2 : i32
    %17 = arith.muli %arg0, %c2_i32 : i32
    %18 = arith.index_cast %17 : i32 to index
    %c0_9 = arith.constant 0 : index
    %19 = vector.load %arg14[%18, %c0_9] : memref<4x128xf32, #tpu.memory_space<vmem>>, vector<2x128xf32>
    tpu.vector_store %arg14[%18, %c0_9], %16 {strides = array<i32>} : memref<4x128xf32, #tpu.memory_space<vmem>>, vector<2x128xf32>,
    %c1_i32 = arith.constant 1 : i32
    %20 = arith.cmpi eq, %arg0, %c1_i32 : i32
    %21 = arith.extui %20 : i1 to i32
    %c0_i32 = arith.constant 0 : i32
    %22 = arith.cmpi ne, %21, %c0_i32 : i32
    scf.if %22 {
      %c0_10 = arith.constant 0 : index
      %c0_11 = arith.constant 0 : index
      %23 = vector.load %arg14[%c0_10, %c0_11] : memref<4x128xf32, #tpu.memory_space<vmem>>, vector<4x128xf32>
      %c0_12 = arith.constant 0 : index
      %c0_13 = arith.constant 0 : index
      %24 = vector.load %arg2[%c0_12, %c0_13] : memref<2x1xf32, #tpu.memory_space<vmem>>, vector<2x1xf32>
      %c0_14 = arith.constant 0 : index
      %c0_15 = arith.constant 0 : index
      %25 = vector.load %arg10[%c0_14, %c0_15] : memref<1x128xf32, #tpu.memory_space<vmem>>, vector<1x128xf32>
      %26 = vector.broadcast %24 : vector<2x1xf32> to vector<2x128xf32>
      %27 = vector.broadcast %25 : vector<1x128xf32> to vector<2x128xf32>
      %28 = arith.mulf %26, %27 : vector<2x128xf32>
      %c0_16 = arith.constant 0 : index
      %c0_17 = arith.constant 0 : index
      %29 = vector.load %arg11[%c0_16, %c0_17] : memref<1x128xf32, #tpu.memory_space<vmem>>, vector<1x128xf32>
      %30 = vector.broadcast %29 : vector<1x128xf32> to vector<2x128xf32>
      %31 = arith.addf %28, %30 : vector<2x128xf32>
      %cst_18 = arith.constant 0.000000e+00 : f32
      %32 = vector.broadcast %cst_18 : f32 to vector<2x128xf32>
      %33 = arith.maximumf %31, %32 : vector<2x128xf32>
      %c0_19 = arith.constant 0 : index
      %c0_20 = arith.constant 0 : index
      %34 = vector.load %arg12[%c0_19, %c0_20] : memref<128x128xf32, #tpu.memory_space<vmem>>, vector<128x128xf32>
      %cst_21 = arith.constant dense<0.000000e+00> : vector<2x128xf32>
      %35 = tpu.matmul %33, %34, %cst_21 {dimension_numbers = #tpu.dot_dimension_numbers<[1], [0], [0], [1], [0, 0, 1, 1], [], []>} : vector<2x128xf32>, vector<128x128xf32>, vector<2x128xf32> -> vector<2x128xf32>
      %c0_22 = arith.constant 0 : index
      %c0_23 = arith.constant 0 : index
      %36 = vector.load %arg5[%c0_22, %c0_23] : memref<128x128xf32, #tpu.memory_space<vmem>>, vector<128x128xf32>
      %cst_24 = arith.constant dense<0.000000e+00> : vector<4x128xf32>
      %37 = tpu.matmul %23, %36, %cst_24 {dimension_numbers = #tpu.dot_dimension_numbers<[1], [0], [0], [1], [0, 0, 1, 1], [], []>} : vector<4x128xf32>, vector<128x128xf32>, vector<4x128xf32> -> vector<4x128xf32>
      %c0_25 = arith.constant 0 : index
      %c0_26 = arith.constant 0 : index
      %38 = vector.load %arg6[%c0_25, %c0_26] : memref<1x128xf32, #tpu.memory_space<vmem>>, vector<1x128xf32>
      %39 = vector.broadcast %38 : vector<1x128xf32> to vector<4x128xf32>
      %40 = arith.addf %37, %39 : vector<4x128xf32>
      %cst_27 = arith.constant 0.000000e+00 : f32
      %41 = vector.broadcast %cst_27 : f32 to vector<4x128xf32>
      %42 = arith.maximumf %40, %41 : vector<4x128xf32>
      %c0_28 = arith.constant 0 : index
      %c0_29 = arith.constant 0 : index
      %43 = vector.load %arg7[%c0_28, %c0_29] : memref<128x128xf32, #tpu.memory_space<vmem>>, vector<128x128xf32>
      %cst_30 = arith.constant dense<0.000000e+00> : vector<4x128xf32>
      %44 = tpu.matmul %42, %43, %cst_30 {dimension_numbers = #tpu.dot_dimension_numbers<[1], [0], [0], [1], [0, 0, 1, 1], [], []>} : vector<4x128xf32>, vector<128x128xf32>, vector<4x128xf32> -> vector<4x128xf32>
      %c0_31 = arith.constant 0 : index
      %c0_32 = arith.constant 0 : index
      %45 = vector.load %arg8[%c0_31, %c0_32] : memref<1x128xf32, #tpu.memory_space<vmem>>, vector<1x128xf32>
      %46 = vector.broadcast %45 : vector<1x128xf32> to vector<4x128xf32>
      %47 = arith.addf %44, %46 : vector<4x128xf32>
      %cst_33 = arith.constant 0.000000e+00 : f32
      %48 = vector.broadcast %cst_33 : f32 to vector<4x128xf32>
      %49 = arith.maximumf %47, %48 : vector<4x128xf32>
      %c0_34 = arith.constant 0 : index
      %c0_35 = arith.constant 0 : index
      %50 = vector.load %arg9[%c0_34, %c0_35] : memref<128x128xf32, #tpu.memory_space<vmem>>, vector<128x128xf32>
      %cst_36 = arith.constant dense<0.000000e+00> : vector<4x128xf32>
      %51 = tpu.matmul %49, %50, %cst_36 {dimension_numbers = #tpu.dot_dimension_numbers<[1], [0], [0], [1], [0, 0, 1, 1], [], []>} : vector<4x128xf32>, vector<128x128xf32>, vector<4x128xf32> -> vector<4x128xf32>
      %c0_37 = arith.constant 0 : index
      %c0_38 = arith.constant 0 : index
      %52 = vector.load %arg13[%c0_37, %c0_38] : memref<12x128xf32, #tpu.memory_space<vmem>>, vector<4x128xf32>
      tpu.vector_store %arg13[%c0_37, %c0_38], %51 {strides = array<i32>} : memref<12x128xf32, #tpu.memory_space<vmem>>, vector<4x128xf32>,
      %c4 = arith.constant 4 : index
      %c0_39 = arith.constant 0 : index
      %53 = vector.load %arg13[%c4, %c0_39] : memref<12x128xf32, #tpu.memory_space<vmem>>, vector<4x128xf32>
      tpu.vector_store %arg13[%c4, %c0_39], %23 {strides = array<i32>} : memref<12x128xf32, #tpu.memory_space<vmem>>, vector<4x128xf32>,
      %54 = vector.extract_strided_slice %23 {offsets = [0, 0], sizes = [2, 128], strides = [1, 1]} : vector<4x128xf32> to vector<2x128xf32>
      %55 = arith.addf %54, %35 : vector<2x128xf32>
      %56 = tpu.concatenate %55, %35 in 0 : vector<2x128xf32>, vector<2x128xf32> -> vector<4x128xf32>
      %c8 = arith.constant 8 : index
      %c0_40 = arith.constant 0 : index
      %57 = vector.load %arg13[%c8, %c0_40] : memref<12x128xf32, #tpu.memory_space<vmem>>, vector<4x128xf32>
      tpu.vector_store %arg13[%c8, %c0_40], %56 {strides = array<i32>} : memref<12x128xf32, #tpu.memory_space<vmem>>, vector<4x128xf32>,
    } else {
    }
    return
  }
  func.func @transform_0(%arg0: i32) -> (i32, i32) {
    %c0_i32 = arith.constant 0 : i32
    %c0_i32_0 = arith.constant 0 : i32
    return %arg0, %c0_i32 : i32, i32
  }
  func.func @transform_1(%arg0: i32) -> (i32, i32) {
    %c0_i32 = arith.constant 0 : i32
    %c0_i32_0 = arith.constant 0 : i32
    %c0_i32_1 = arith.constant 0 : i32
    return %c0_i32, %c0_i32_0 : i32, i32
  }
  func.func @transform_2(%arg0: i32) -> (i32, i32) {
    %c0_i32 = arith.constant 0 : i32
    %c0_i32_0 = arith.constant 0 : i32
    %c0_i32_1 = arith.constant 0 : i32
    return %c0_i32, %c0_i32_0 : i32, i32
  }
  func.func @transform_3(%arg0: i32) -> (i32, i32) {
    %c0_i32 = arith.constant 0 : i32
    %c0_i32_0 = arith.constant 0 : i32
    %c0_i32_1 = arith.constant 0 : i32
    return %c0_i32, %c0_i32_0 : i32, i32
  }
  func.func @transform_4(%arg0: i32) -> (i32, i32) {
    %c0_i32 = arith.constant 0 : i32
    %c0_i32_0 = arith.constant 0 : i32
    %c0_i32_1 = arith.constant 0 : i32
    return %c0_i32, %c0_i32_0 : i32, i32
  }
  func.func @transform_5(%arg0: i32) -> (i32, i32) {
    %c0_i32 = arith.constant 0 : i32
    %c0_i32_0 = arith.constant 0 : i32
    %c0_i32_1 = arith.constant 0 : i32
    return %c0_i32, %c0_i32_0 : i32, i32
  }
  func.func @transform_6(%arg0: i32) -> (i32, i32) {
    %c0_i32 = arith.constant 0 : i32
    %c0_i32_0 = arith.constant 0 : i32
    %c0_i32_1 = arith.constant 0 : i32
    return %c0_i32, %c0_i32_0 : i32, i32
  }
  func.func @transform_7(%arg0: i32) -> (i32, i32) {
    %c0_i32 = arith.constant 0 : i32
    %c0_i32_0 = arith.constant 0 : i32
    %c0_i32_1 = arith.constant 0 : i32
    return %c0_i32, %c0_i32_0 : i32, i32
  }
  func.func @transform_8(%arg0: i32) -> (i32, i32) {
    %c0_i32 = arith.constant 0 : i32
    %c0_i32_0 = arith.constant 0 : i32
    %c0_i32_1 = arith.constant 0 : i32
    return %c0_i32, %c0_i32_0 : i32, i32
  }
  func.func @transform_9(%arg0: i32) -> (i32, i32) {
    %c0_i32 = arith.constant 0 : i32
    %c0_i32_0 = arith.constant 0 : i32
    %c0_i32_1 = arith.constant 0 : i32
    return %c0_i32, %c0_i32_0 : i32, i32
  }
  func.func @transform_10(%arg0: i32) -> (i32, i32) {
    %c0_i32 = arith.constant 0 : i32
    %c0_i32_0 = arith.constant 0 : i32
    %c0_i32_1 = arith.constant 0 : i32
    return %c0_i32, %c0_i32_0 : i32, i32
  }
  func.func @transform_11(%arg0: i32) -> (i32, i32) {
    %c0_i32 = arith.constant 0 : i32
    %c0_i32_0 = arith.constant 0 : i32
    %c0_i32_1 = arith.constant 0 : i32
    return %c0_i32, %c0_i32_0 : i32, i32
  }
  func.func @transform_12(%arg0: i32) -> (i32, i32) {
    %c0_i32 = arith.constant 0 : i32
    %c0_i32_0 = arith.constant 0 : i32
    %c0_i32_1 = arith.constant 0 : i32
    return %c0_i32, %c0_i32_0 : i32, i32
  }
}

</mosaic_0001>

<bundles_post_ra>
// kernel: tc_ind_forward.1
= control target key start
LH: loop header
LB: loop body
LE: loop exit
PB: predicated region body
PF: predicated region fallthrough
CT: control target
= control target key end

     0   :  { %s1995_s21 = smov 0   ;;  %s2490_s0 = inlined_call_operand.vmem [shape: f32[1024,128], index: 0, kind: input, shape index: {}]   ;;  %s2491_s1 = inlined_call_operand.vmem [shape: f32[2,1], index: 1, kind: input, shape index: {}]   ;;  %s2492_s2 = inlined_call_operand.vmem [shape: f32[128,128], index: 2, kind: input, shape index: {}]   ;;  %s2493_s3 = inlined_call_operand.vmem [shape: f32[1,128], index: 3, kind: input, shape index: {}]   ;;  %s2494_s4 = inlined_call_operand.vmem [shape: f32[128,128], index: 4, kind: input, shape index: {}]   ;;  %s2495_s5 = inlined_call_operand.vmem [shape: f32[1,128], index: 5, kind: input, shape index: {}]   ;;  %s2496_s6 = inlined_call_operand.vmem [shape: f32[128,128], index: 6, kind: input, shape index: {}]   ;;  %s2497_s7 = inlined_call_operand.vmem [shape: f32[1,128], index: 7, kind: input, shape index: {}]   ;;  %s2498_s8 = inlined_call_operand.vmem [shape: f32[128,128], index: 8, kind: input, shape index: {}]   ;;  %s2499_s9 = inlined_call_operand.vmem [shape: f32[1,128], index: 9, kind: input, shape index: {}]   ;;  %s2500_s10 = inlined_call_operand.vmem [shape: f32[1,128], index: 10, kind: input, shape index: {}]   ;;  %s2501_s11 = inlined_call_operand.vmem [shape: f32[128,128], index: 11, kind: input, shape index: {}]   ;;  %s2502_s12 = inlined_call_operand.vmem [shape: f32[12,128], index: 12, kind: output, shape index: {}]  }
   0x1 LB: > { %s2001_s22 = sadd.s32 4294967295, %s1925_s21   ;;  %p1447_p0 = scmp.ge.s32.totalorder %s1925_s21, 1  ;;  %s1925_s21 = sphi %s1995_s21, %s22_s21  }
   0x2   : > { %p358_p1 = scmp.lt.s32.totalorder %s1925_s21, 3 }
   0x4   : > { %p359_p2 = pnand %p1447_p0, %p358_p1 }
   0x5   : > { %s1448_s23 = sshll.u32 (!%p359_p2), %s2001_s22, 6  ;;  %s1451_s30 = sshll.u32 (!%p359_p2), %s2001_s22, 1 }
   0x6   : > { %362 = sbr.rel (%p359_p2) target bundleno = 946 (0x3b2), region = 68  ;;  %p396_p3 = scmp.lt.s32.totalorder (!%p359_p2), %s1448_s23, 127 }
   0x7   : > { %s1015_s13 = scalar_lea.vmem (!%p359_p2), [#allocation2], %s1451_s30  ;;  %p1452_p4 = scmp.ne.s32.totalorder (!%p359_p2), %s2001_s22, 1 }
   0xb   : > { %v480_v0 = vld [vmem:[%s2492_s2 + $0x78] sm:$0xff]  ;;  %v479_v1 = vld [vmem:[%s2492_s2 + $0x70] sm:$0xff]  ;;  %v478_v2 = vld [vmem:[%s2492_s2 + $0x68] sm:$0xff]  ;;  %s2504_s23 = smov (!%p396_p3, %s1448_s23), 127  ;;  %vm1011_vm0 = vcmask 1040384  }
   0xc   : > { %1607 = vmatprep.subr.mxu0 %v480_v0  ;;  %1875 = vmatprep.subr.mxu1 %v480_v0  ;;  %v477_v3 = vld [vmem:[%s2492_s2 + $0x60] sm:$0xff]  ;;  %v476_v4 = vld [vmem:[%s2492_s2 + $0x58] sm:$0xff]  ;;  %v475_v5 = vld [vmem:[%s2492_s2 + $0x50] sm:$0xff]  ;;  %s1449_s18 = sshll.u32 %s2504_s23, 3 }
   0xd   : > { %1608 = vmatpush3.msra.mxu0 %v480_v0  ;;  %1891 = vmatpush3.msra.mxu1 %v480_v0  ;;  %v474_v6 = vld [vmem:[%s2492_s2 + $0x48] sm:$0xff]  ;;  %v473_v7 = vld [vmem:[%s2492_s2 + $0x40] sm:$0xff]  ;;  %v472_v8 = vld [vmem:[%s2492_s2 + $0x38] sm:$0xff]  ;;  %s2054_s26 = scalar_lea.vmem %s2490_s0, %s1449_s18 }
   0xe   : > { %1609 = vmatprep.subr.mxu0 %v479_v1  ;;  %1876 = vmatprep.subr.mxu1 %v479_v1  ;;  %v471_v9 = vld [vmem:[%s2492_s2 + $0x30] sm:$0xff]  ;;  %v470_v10 = vld [vmem:[%s2492_s2 + $0x28] sm:$0xff]  ;;  %v469_v11 = vld [vmem:[%s2492_s2 + $0x20] sm:$0xff] }
   0xf   : > { %1610 = vmatpush3.msra.mxu0 %v479_v1  ;;  %1892 = vmatpush3.msra.mxu1 %v479_v1  ;;  %v468_v12 = vld [vmem:[%s2492_s2 + $0x18] sm:$0xff]  ;;  %v467_v13 = vld [vmem:[%s2492_s2 + $0x10] sm:$0xff]  ;;  %v466_v14 = vld [vmem:[%s2492_s2 + $0x8] sm:$0xff] }
  0x10   : > { %1611 = vmatprep.subr.mxu0 %v478_v2  ;;  %1877 = vmatprep.subr.mxu1 %v478_v2  ;;  %v465_v15 = vld [vmem:[%s2492_s2] sm:$0xff]  ;;  %v402_v18 = vld [vmem:[%s2054_s26 + $0x8] sm:$0xff]  ;;  %v403_v20 = vld [vmem:[%s2054_s26 + $0x10] sm:$0xff] }
  0x11   : > { %1612 = vmatpush3.msra.mxu0 %v478_v2  ;;  %1893 = vmatpush3.msra.mxu1 %v478_v2  ;;  %v401_v16 = vld [vmem:[%s2054_s26] sm:$0xff]  ;;  %v434_v19 = vld [vmem:[%s2054_s26 + $0x108] sm:$0xff]  ;;  %v435_v21 = vld [vmem:[%s2054_s26 + $0x110] sm:$0xff] }
  0x12   : > { %1613 = vmatprep.subr.mxu0 %v477_v3  ;;  %1878 = vmatprep.subr.mxu1 %v477_v3  ;;  %v433_v17 = vld [vmem:[%s2054_s26 + $0x100] sm:$0xff]  ;;  %v404_v22 = vld [vmem:[%s2054_s26 + $0x18] sm:$0xff]  ;;  %v406_v26 = vld [vmem:[%s2054_s26 + $0x28] sm:$0xff] }
  0x13   : > { %1614 = vmatpush3.msra.mxu0 %v477_v3  ;;  %1894 = vmatpush3.msra.mxu1 %v477_v3  ;;  %v436_v23 = vld [vmem:[%s2054_s26 + $0x118] sm:$0xff]  ;;  %v405_v24 = vld [vmem:[%s2054_s26 + $0x20] sm:$0xff]  ;;  %v438_v27 = vld [vmem:[%s2054_s26 + $0x128] sm:$0xff] }
  0x14   : > { %1615 = vmatprep.subr.mxu0 %v476_v4  ;;  %1879 = vmatprep.subr.mxu1 %v476_v4  ;;  %v437_v25 = vld [vmem:[%s2054_s26 + $0x120] sm:$0xff]  ;;  %v407_v28 = vld [vmem:[%s2054_s26 + $0x30] sm:$0xff]  ;;  %v408_v30 = vld [vmem:[%s2054_s26 + $0x38] sm:$0xff] }
  0x15   : > { %1616 = vmatpush3.msra.mxu0 %v476_v4  ;;  %1895 = vmatpush3.msra.mxu1 %v476_v4  ;;  %v439_v29 = vld [vmem:[%s2054_s26 + $0x130] sm:$0xff]  ;;  %v440_v31 = vld [vmem:[%s2054_s26 + $0x138] sm:$0xff]  ;;  %v409_v32 = vld [vmem:[%s2054_s26 + $0x40] sm:$0xff] }
  0x16   : > { %1617 = vmatprep.subr.mxu0 %v475_v5  ;;  %1880 = vmatprep.subr.mxu1 %v475_v5  ;;  %v441_v33 = vld [vmem:[%s2054_s26 + $0x140] sm:$0xff]  ;;  %v410_v34 = vld [vmem:[%s2054_s26 + $0x48] sm:$0xff]  ;;  %v411_v36 = vld [vmem:[%s2054_s26 + $0x50] sm:$0xff] }
  0x17   : > { %1618 = vmatpush3.msra.mxu0 %v475_v5  ;;  %1896 = vmatpush3.msra.mxu1 %v475_v5  ;;  %v442_v35 = vld [vmem:[%s2054_s26 + $0x148] sm:$0xff]  ;;  %v443_v37 = vld [vmem:[%s2054_s26 + $0x150] sm:$0xff]  ;;  %v412_v38 = vld [vmem:[%s2054_s26 + $0x58] sm:$0xff] }
  0x18   : > { %1619 = vmatprep.subr.mxu0 %v474_v6  ;;  %1881 = vmatprep.subr.mxu1 %v474_v6  ;;  %v444_v39 = vld [vmem:[%s2054_s26 + $0x158] sm:$0xff]  ;;  %v413_v40 = vld [vmem:[%s2054_s26 + $0x60] sm:$0xff]  ;;  %v414_v42 = vld [vmem:[%s2054_s26 + $0x68] sm:$0xff] }
  0x19   : > { %1620 = vmatpush3.msra.mxu0 %v474_v6  ;;  %1897 = vmatpush3.msra.mxu1 %v474_v6  ;;  %v445_v41 = vld [vmem:[%s2054_s26 + $0x160] sm:$0xff]  ;;  %v446_v43 = vld [vmem:[%s2054_s26 + $0x168] sm:$0xff]  ;;  %v415_v44 = vld [vmem:[%s2054_s26 + $0x70] sm:$0xff] }
  0x1a   : > { %1621 = vmatprep.subr.mxu0 %v473_v7  ;;  %1882 = vmatprep.subr.mxu1 %v473_v7  ;;  %v447_v45 = vld [vmem:[%s2054_s26 + $0x170] sm:$0xff]  ;;  %v416_v46 = vld [vmem:[%s2054_s26 + $0x78] sm:$0xff]  ;;  %v417_v48 = vld [vmem:[%s2054_s26 + $0x80] sm:$0xff] }
  0x1b   : > { %1622 = vmatpush3.msra.mxu0 %v473_v7  ;;  %1898 = vmatpush3.msra.mxu1 %v473_v7  ;;  %v448_v47 = vld [vmem:[%s2054_s26 + $0x178] sm:$0xff]  ;;  %v449_v49 = vld [vmem:[%s2054_s26 + $0x180] sm:$0xff]  ;;  %v418_v50 = vld [vmem:[%s2054_s26 + $0x88] sm:$0xff] }
  0x1c   : > { %1623 = vmatprep.subr.mxu0 %v472_v8  ;;  %1883 = vmatprep.subr.mxu1 %v472_v8  ;;  %v450_v51 = vld [vmem:[%s2054_s26 + $0x188] sm:$0xff]  ;;  %v419_v52 = vld [vmem:[%s2054_s26 + $0x90] sm:$0xff]  ;;  %v420_v54 = vld [vmem:[%s2054_s26 + $0x98] sm:$0xff] }
  0x1d   : > { %1624 = vmatpush3.msra.mxu0 %v472_v8  ;;  %1899 = vmatpush3.msra.mxu1 %v472_v8  ;;  %v451_v53 = vld [vmem:[%s2054_s26 + $0x190] sm:$0xff]  ;;  %v452_v55 = vld [vmem:[%s2054_s26 + $0x198] sm:$0xff]  ;;  %v421_v56 = vld [vmem:[%s2054_s26 + $0xa0] sm:$0xff] }
  0x1e   : > { %1625 = vmatprep.subr.mxu0 %v471_v9  ;;  %1884 = vmatprep.subr.mxu1 %v471_v9  ;;  %v453_v57 = vld [vmem:[%s2054_s26 + $0x1a0] sm:$0xff]  ;;  %v422_v58 = vld [vmem:[%s2054_s26 + $0xa8] sm:$0xff]  ;;  %v423_v60 = vld [vmem:[%s2054_s26 + $0xb0] sm:$0xff] }
  0x1f   : > { %1626 = vmatpush3.msra.mxu0 %v471_v9  ;;  %1900 = vmatpush3.msra.mxu1 %v471_v9  ;;  %v454_v59 = vld [vmem:[%s2054_s26 + $0x1a8] sm:$0xff]  ;;  %v455_v61 = vld [vmem:[%s2054_s26 + $0x1b0] sm:$0xff]  ;;  %v424_v62 = vld [vmem:[%s2054_s26 + $0xb8] sm:$0xff] }
  0x20   : > { %1627 = vmatprep.subr.mxu0 %v470_v10  ;;  %1885 = vmatprep.subr.mxu1 %v470_v10  ;;  %v456_v63 = vld [vmem:[%s2054_s26 + $0x1b8] sm:$0xff]  ;;  %v425_v0 = vld [vmem:[%s2054_s26 + $0xc0] sm:$0xff]  ;;  %v426_v2 = vld [vmem:[%s2054_s26 + $0xc8] sm:$0xff] }
  0x21   : > { %1628 = vmatpush3.msra.mxu0 %v470_v10  ;;  %1901 = vmatpush3.msra.mxu1 %v470_v10  ;;  %v457_v1 = vld [vmem:[%s2054_s26 + $0x1c0] sm:$0xff]  ;;  %v458_v3 = vld [vmem:[%s2054_s26 + $0x1c8] sm:$0xff]  ;;  %v427_v4 = vld [vmem:[%s2054_s26 + $0xd0] sm:$0xff] }
  0x22   : > { %1629 = vmatprep.subr.mxu0 %v469_v11  ;;  %1886 = vmatprep.subr.mxu1 %v469_v11  ;;  %v459_v5 = vld [vmem:[%s2054_s26 + $0x1d0] sm:$0xff]  ;;  %v428_v6 = vld [vmem:[%s2054_s26 + $0xd8] sm:$0xff]  ;;  %v429_v8 = vld [vmem:[%s2054_s26 + $0xe0] sm:$0xff] }
  0x23   : > { %1630 = vmatpush3.msra.mxu0 %v469_v11  ;;  %1902 = vmatpush3.msra.mxu1 %v469_v11  ;;  %v460_v7 = vld [vmem:[%s2054_s26 + $0x1d8] sm:$0xff]  ;;  %v461_v9 = vld [vmem:[%s2054_s26 + $0x1e0] sm:$0xff]  ;;  %v430_v10 = vld [vmem:[%s2054_s26 + $0xe8] sm:$0xff] }
  0x24   : > { %1631 = vmatprep.subr.mxu0 %v468_v12  ;;  %1887 = vmatprep.subr.mxu1 %v468_v12  ;;  %v462_v11 = vld [vmem:[%s2054_s26 + $0x1e8] sm:$0xff] }
  0x25   : > { %1632 = vmatpush3.msra.mxu0 %v468_v12  ;;  %1903 = vmatpush3.msra.mxu1 %v468_v12  ;;  %v431_v12 = vld [vmem:[%s2054_s26 + $0xf0] sm:$0xff] }
  0x26   : > { %1633 = vmatprep.subr.mxu0 %v467_v13  ;;  %1888 = vmatprep.subr.mxu1 %v467_v13 }
  0x27   : > { %1634 = vmatpush3.msra.mxu0 %v467_v13  ;;  %1904 = vmatpush3.msra.mxu1 %v467_v13  ;;  %v463_v13 = vld [vmem:[%s2054_s26 + $0x1f0] sm:$0xff] }
  0x28   : > { %1635 = vmatprep.subr.mxu0 %v466_v14  ;;  %1889 = vmatprep.subr.mxu1 %v466_v14 }
  0x29   : > { %1636 = vmatpush3.msra.mxu0 %v466_v14  ;;  %1905 = vmatpush3.msra.mxu1 %v466_v14  ;;  %v432_v14 = vld [vmem:[%s2054_s26 + $0xf8] sm:$0xff] }
  0x2a   : > { %1637 = vmatprep.subr.mxu0 %v465_v15  ;;  %1890 = vmatprep.subr.mxu1 %v465_v15 }
  0x2b   : > { %1638 = vmatpush3.msra.mxu0 %v465_v15  ;;  %1906 = vmatpush3.msra.mxu1 %v465_v15  ;;  %v464_v15 = vld [vmem:[%s2054_s26 + $0x1f8] sm:$0xff] }
  0x2c   : > { %1639 = vmatprep.mubr.f32.mxu0 %v401_v16  ;;  %1687 = vmatprep.mubr.f32.mxu1 %v433_v17  ;;  %v2126_v17 = vld [vmem:[%s2493_s3] ss:$0 sm:$0xff] }
  0x2d   : > { %1640 = vmatmul.mubr.f32.vlgmr.msra.gmra.mxu0 %v402_v18  ;;  %1688 = vmatmul.mubr.f32.vlgmr.msra.gmra.mxu1 %v434_v19 }
  0x2e   : > { %1642 = vmatprep.mubr.f32.mxu0 %v403_v20  ;;  %1690 = vmatprep.mubr.f32.mxu1 %v435_v21 }
  0x31   : > { %1643 = vmatmul.mubr.f32.gmra.mxu0 %v404_v22  ;;  %1691 = vmatmul.mubr.f32.gmra.mxu1 %v436_v23 }
  0x32   : > { %1645 = vmatprep.mubr.f32.mxu0 %v405_v24  ;;  %1693 = vmatprep.mubr.f32.mxu1 %v437_v25 }
  0x35   : > { %1646 = vmatmul.mubr.f32.gmra.mxu0 %v406_v26  ;;  %1694 = vmatmul.mubr.f32.gmra.mxu1 %v438_v27 }
  0x36   : > { %1648 = vmatprep.mubr.f32.mxu0 %v407_v28  ;;  %1696 = vmatprep.mubr.f32.mxu1 %v439_v29 }
  0x39   : > { %1649 = vmatmul.mubr.f32.gmra.mxu0 %v408_v30  ;;  %1697 = vmatmul.mubr.f32.gmra.mxu1 %v440_v31 }
  0x3a   : > { %1651 = vmatprep.mubr.f32.mxu0 %v409_v32  ;;  %1699 = vmatprep.mubr.f32.mxu1 %v441_v33 }
  0x3d   : > { %1652 = vmatmul.mubr.f32.gmra.mxu0 %v410_v34  ;;  %1700 = vmatmul.mubr.f32.gmra.mxu1 %v442_v35 }
  0x3e   : > { %1654 = vmatprep.mubr.f32.mxu0 %v411_v36  ;;  %1702 = vmatprep.mubr.f32.mxu1 %v443_v37 }
  0x41   : > { %1655 = vmatmul.mubr.f32.gmra.mxu0 %v412_v38  ;;  %1703 = vmatmul.mubr.f32.gmra.mxu1 %v444_v39 }
  0x42   : > { %1657 = vmatprep.mubr.f32.mxu0 %v413_v40  ;;  %1705 = vmatprep.mubr.f32.mxu1 %v445_v41 }
  0x45   : > { %1658 = vmatmul.mubr.f32.gmra.mxu0 %v414_v42  ;;  %1706 = vmatmul.mubr.f32.gmra.mxu1 %v446_v43 }
  0x46   : > { %1660 = vmatprep.mubr.f32.mxu0 %v415_v44  ;;  %1708 = vmatprep.mubr.f32.mxu1 %v447_v45 }
  0x49   : > { %1661 = vmatmul.mubr.f32.gmra.mxu0 %v416_v46  ;;  %1709 = vmatmul.mubr.f32.gmra.mxu1 %v448_v47 }
  0x4a   : > { %1663 = vmatprep.mubr.f32.mxu0 %v417_v48  ;;  %1711 = vmatprep.mubr.f32.mxu1 %v449_v49 }
  0x4d   : > { %1664 = vmatmul.mubr.f32.gmra.mxu0 %v418_v50  ;;  %1712 = vmatmul.mubr.f32.gmra.mxu1 %v450_v51 }
  0x4e   : > { %1666 = vmatprep.mubr.f32.mxu0 %v419_v52  ;;  %1714 = vmatprep.mubr.f32.mxu1 %v451_v53 }
  0x51   : > { %1667 = vmatmul.mubr.f32.gmra.mxu0 %v420_v54  ;;  %1715 = vmatmul.mubr.f32.gmra.mxu1 %v452_v55 }
  0x52   : > { %1669 = vmatprep.mubr.f32.mxu0 %v421_v56  ;;  %1717 = vmatprep.mubr.f32.mxu1 %v453_v57 }
  0x55   : > { %1670 = vmatmul.mubr.f32.gmra.mxu0 %v422_v58  ;;  %1718 = vmatmul.mubr.f32.gmra.mxu1 %v454_v59 }
  0x56   : > { %1672 = vmatprep.mubr.f32.mxu0 %v423_v60  ;;  %1720 = vmatprep.mubr.f32.mxu1 %v455_v61 }
  0x59   : > { %1673 = vmatmul.mubr.f32.gmra.mxu0 %v424_v62  ;;  %1721 = vmatmul.mubr.f32.gmra.mxu1 %v456_v63 }
  0x5a   : > { %1675 = vmatprep.mubr.f32.mxu0 %v425_v0  ;;  %1723 = vmatprep.mubr.f32.mxu1 %v457_v1 }
  0x5d   : > { %1676 = vmatmul.mubr.f32.gmra.mxu0 %v426_v2  ;;  %1724 = vmatmul.mubr.f32.gmra.mxu1 %v458_v3 }
  0x5e   : > { %1678 = vmatprep.mubr.f32.mxu0 %v427_v4  ;;  %1726 = vmatprep.mubr.f32.mxu1 %v459_v5 }
  0x61   : > { %1679 = vmatmul.mubr.f32.gmra.mxu0 %v428_v6  ;;  %1727 = vmatmul.mubr.f32.gmra.mxu1 %v460_v7 }
  0x62   : > { %1681 = vmatprep.mubr.f32.mxu0 %v429_v8  ;;  %1729 = vmatprep.mubr.f32.mxu1 %v461_v9 }
  0x65   : > { %1682 = vmatmul.mubr.f32.gmra.mxu0 %v430_v10  ;;  %1730 = vmatmul.mubr.f32.gmra.mxu1 %v462_v11 }
  0x66   : > { %1684 = vmatprep.mubr.f32.mxu0 %v431_v12  ;;  %1732 = vmatprep.mubr.f32.mxu1 %v463_v13 }
  0x69   : > { %1685 = vmatmul.mubr.f32.gmra.mxu0 %v432_v14  ;;  %1733 = vmatmul.mubr.f32.gmra.mxu1 %v464_v15 }
  0xed   : > { %v1641_v16 = vpop.f32.mrf.mxu0  ;;  %v1689_v18 = vpop.f32.mrf.mxu1 }
  0xee   : > { %v560_v21 = vadd.f32 %v1641_v16, %v2126_v17  ;;  %v720_v22 = vadd.f32 %v1689_v18, %v2126_v17 }
  0xef   : > { %v554_v19 = vpop.f32.mrf.mxu0  ;;  %v714_v20 = vpop.f32.mrf.mxu1 }
  0xf0   : > { %v555_v23 = vadd.f32 %v2126_v17, %v554_v19  ;;  %v715_v24 = vadd.f32 %v2126_v17, %v714_v20  ;;  %v874_v31 = vmax.f32 %v560_v21, 0.0  ;;  %v906_v32 = vmax.f32 %v720_v22, 0.0 }
  0xf1   : > { %v1644_v25 = vpop.f32.mrf.mxu0  ;;  %v1692_v26 = vpop.f32.mrf.mxu1 }
  0xf2   : > { %v873_v27 = vmax.f32 %v555_v23, 0.0  ;;  %v905_v28 = vmax.f32 %v715_v24, 0.0  ;;  %v570_v33 = vadd.f32 %v1644_v25, %v2126_v17  ;;  %v730_v34 = vadd.f32 %v1692_v26, %v2126_v17 }
  0xf3   : > { %v564_v29 = vpop.f32.mrf.mxu0  ;;  %v724_v30 = vpop.f32.mrf.mxu1 }
  0xf4   : > { %v565_v35 = vadd.f32 %v2126_v17, %v564_v29  ;;  %v725_v36 = vadd.f32 %v2126_v17, %v724_v30  ;;  %v937_v39 = vadd.f32 %v874_v31, %v873_v27  ;;  %v974_v40 = vadd.f32 %v906_v32, %v905_v28 }
  0xf5   : > { %v1647_v37 = vpop.f32.mrf.mxu0  ;;  %v1695_v38 = vpop.f32.mrf.mxu1  ;;  %v876_v49 = vmax.f32 %v570_v33, 0.0  ;;  %v908_v50 = vmax.f32 %v730_v34, 0.0 }
  0xf6   : > { %v875_v41 = vmax.f32 %v565_v35, 0.0  ;;  %v907_v42 = vmax.f32 %v725_v36, 0.0  ;;  %v580_v45 = vadd.f32 %v1647_v37, %v2126_v17  ;;  %v740_v46 = vadd.f32 %v1695_v38, %v2126_v17 }
  0xf7   : > { %v574_v43 = vpop.f32.mrf.mxu0  ;;  %v734_v44 = vpop.f32.mrf.mxu1 }
  0xf8   : > { %v575_v47 = vadd.f32 %v2126_v17, %v574_v43  ;;  %v735_v48 = vadd.f32 %v2126_v17, %v734_v44  ;;  %v938_v51 = vadd.f32 %v937_v39, %v875_v41  ;;  %v975_v52 = vadd.f32 %v974_v40, %v907_v42 }
  0xf9   : > { %v1650_v53 = vpop.f32.mrf.mxu0  ;;  %v1698_v54 = vpop.f32.mrf.mxu1  ;;  %v878_v61 = vmax.f32 %v580_v45, 0.0  ;;  %v910_v62 = vmax.f32 %v740_v46, 0.0 }
  0xfa   : > { %v877_v55 = vmax.f32 %v575_v47, 0.0  ;;  %v909_v56 = vmax.f32 %v735_v48, 0.0  ;;  %v939_v57 = vadd.f32 %v938_v51, %v876_v49  ;;  %v976_v58 = vadd.f32 %v975_v52, %v908_v50 }
  0xfb   : > { %v584_v59 = vpop.f32.mrf.mxu0  ;;  %v744_v60 = vpop.f32.mrf.mxu1  ;;  %v590_v3 = vadd.f32 %v1650_v53, %v2126_v17  ;;  %v750_v4 = vadd.f32 %v1698_v54, %v2126_v17 }
  0xfc   : > { %v585_v63 = vadd.f32 %v2126_v17, %v584_v59  ;;  %v745_v0 = vadd.f32 %v2126_v17, %v744_v60  ;;  %v940_v1 = vadd.f32 %v939_v57, %v877_v55  ;;  %v977_v2 = vadd.f32 %v976_v58, %v909_v56 }
  0xfd   : > { %v1653_v5 = vpop.f32.mrf.mxu0  ;;  %v1701_v6 = vpop.f32.mrf.mxu1  ;;  %v880_v18 = vmax.f32 %v590_v3, 0.0  ;;  %v912_v19 = vmax.f32 %v750_v4, 0.0 }
  0xfe   : > { %v879_v7 = vmax.f32 %v585_v63, 0.0  ;;  %v911_v8 = vmax.f32 %v745_v0, 0.0  ;;  %v941_v9 = vadd.f32 %v940_v1, %v878_v61  ;;  %v978_v10 = vadd.f32 %v977_v2, %v910_v62 }
  0xff   : > { %v594_v11 = vpop.f32.mrf.mxu0  ;;  %v754_v12 = vpop.f32.mrf.mxu1  ;;  %v600_v13 = vadd.f32 %v1653_v5, %v2126_v17  ;;  %v760_v14 = vadd.f32 %v1701_v6, %v2126_v17 }
 0x100   : > { %v595_v15 = vadd.f32 %v2126_v17, %v594_v11  ;;  %v755_v16 = vadd.f32 %v2126_v17, %v754_v12  ;;  %v942_v20 = vadd.f32 %v941_v9, %v879_v7  ;;  %v979_v21 = vadd.f32 %v978_v10, %v911_v8 }
 0x101   : > { %v1656_v22 = vpop.f32.mrf.mxu0  ;;  %v1704_v23 = vpop.f32.mrf.mxu1  ;;  %v882_v30 = vmax.f32 %v600_v13, 0.0  ;;  %v914_v31 = vmax.f32 %v760_v14, 0.0 }
 0x102   : > { %v881_v24 = vmax.f32 %v595_v15, 0.0  ;;  %v913_v25 = vmax.f32 %v755_v16, 0.0  ;;  %v943_v26 = vadd.f32 %v942_v20, %v880_v18  ;;  %v980_v27 = vadd.f32 %v979_v21, %v912_v19 }
 0x103   : > { %v604_v28 = vpop.f32.mrf.mxu0  ;;  %v764_v29 = vpop.f32.mrf.mxu1  ;;  %v610_v36 = vadd.f32 %v1656_v22, %v2126_v17  ;;  %v770_v37 = vadd.f32 %v1704_v23, %v2126_v17 }
 0x104   : > { %v605_v32 = vadd.f32 %v2126_v17, %v604_v28  ;;  %v765_v33 = vadd.f32 %v2126_v17, %v764_v29  ;;  %v944_v34 = vadd.f32 %v943_v26, %v881_v24  ;;  %v981_v35 = vadd.f32 %v980_v27, %v913_v25 }
 0x105   : > { %v1659_v38 = vpop.f32.mrf.mxu0  ;;  %v1707_v39 = vpop.f32.mrf.mxu1  ;;  %v884_v50 = vmax.f32 %v610_v36, 0.0  ;;  %v916_v51 = vmax.f32 %v770_v37, 0.0 }
 0x106   : > { %v883_v40 = vmax.f32 %v605_v32, 0.0  ;;  %v915_v41 = vmax.f32 %v765_v33, 0.0  ;;  %v945_v42 = vadd.f32 %v944_v34, %v882_v30  ;;  %v982_v43 = vadd.f32 %v981_v35, %v914_v31 }
 0x107   : > { %v614_v44 = vpop.f32.mrf.mxu0  ;;  %v774_v45 = vpop.f32.mrf.mxu1  ;;  %v620_v46 = vadd.f32 %v1659_v38, %v2126_v17  ;;  %v780_v47 = vadd.f32 %v1707_v39, %v2126_v17 }
 0x108   : > { %v615_v48 = vadd.f32 %v2126_v17, %v614_v44  ;;  %v775_v49 = vadd.f32 %v2126_v17, %v774_v45  ;;  %v946_v52 = vadd.f32 %v945_v42, %v883_v40  ;;  %v983_v53 = vadd.f32 %v982_v43, %v915_v41 }
 0x109   : > { %v1662_v54 = vpop.f32.mrf.mxu0  ;;  %v1710_v55 = vpop.f32.mrf.mxu1  ;;  %v886_v62 = vmax.f32 %v620_v46, 0.0  ;;  %v918_v63 = vmax.f32 %v780_v47, 0.0 }
 0x10a   : > { %v885_v56 = vmax.f32 %v615_v48, 0.0  ;;  %v917_v57 = vmax.f32 %v775_v49, 0.0  ;;  %v947_v58 = vadd.f32 %v946_v52, %v884_v50  ;;  %v984_v59 = vadd.f32 %v983_v53, %v916_v51 }
 0x10b   : > { %v624_v60 = vpop.f32.mrf.mxu0  ;;  %v784_v61 = vpop.f32.mrf.mxu1  ;;  %v630_v4 = vadd.f32 %v1662_v54, %v2126_v17  ;;  %v790_v5 = vadd.f32 %v1710_v55, %v2126_v17 }
 0x10c   : > { %v625_v0 = vadd.f32 %v2126_v17, %v624_v60  ;;  %v785_v1 = vadd.f32 %v2126_v17, %v784_v61  ;;  %v948_v2 = vadd.f32 %v947_v58, %v885_v56  ;;  %v985_v3 = vadd.f32 %v984_v59, %v917_v57 }
 0x10d   : > { %v1665_v6 = vpop.f32.mrf.mxu0  ;;  %v1713_v7 = vpop.f32.mrf.mxu1  ;;  %v888_v19 = vmax.f32 %v630_v4, 0.0  ;;  %v920_v20 = vmax.f32 %v790_v5, 0.0 }
 0x10e   : > { %v887_v8 = vmax.f32 %v625_v0, 0.0  ;;  %v919_v9 = vmax.f32 %v785_v1, 0.0  ;;  %v949_v10 = vadd.f32 %v948_v2, %v886_v62  ;;  %v986_v11 = vadd.f32 %v985_v3, %v918_v63 }
 0x10f   : > { %v634_v12 = vpop.f32.mrf.mxu0  ;;  %v794_v13 = vpop.f32.mrf.mxu1  ;;  %v640_v14 = vadd.f32 %v1665_v6, %v2126_v17  ;;  %v800_v15 = vadd.f32 %v1713_v7, %v2126_v17 }
 0x110   : > { %v635_v16 = vadd.f32 %v2126_v17, %v634_v12  ;;  %v795_v18 = vadd.f32 %v2126_v17, %v794_v13  ;;  %v950_v21 = vadd.f32 %v949_v10, %v887_v8  ;;  %v987_v22 = vadd.f32 %v986_v11, %v919_v9 }
 0x111   : > { %v1668_v23 = vpop.f32.mrf.mxu0  ;;  %v1716_v24 = vpop.f32.mrf.mxu1  ;;  %v890_v31 = vmax.f32 %v640_v14, 0.0  ;;  %v922_v32 = vmax.f32 %v800_v15, 0.0 }
 0x112   : > { %v889_v25 = vmax.f32 %v635_v16, 0.0  ;;  %v921_v26 = vmax.f32 %v795_v18, 0.0  ;;  %v951_v27 = vadd.f32 %v950_v21, %v888_v19  ;;  %v988_v28 = vadd.f32 %v987_v22, %v920_v20 }
 0x113   : > { %v644_v29 = vpop.f32.mrf.mxu0  ;;  %v804_v30 = vpop.f32.mrf.mxu1  ;;  %v650_v37 = vadd.f32 %v1668_v23, %v2126_v17  ;;  %v810_v38 = vadd.f32 %v1716_v24, %v2126_v17 }
 0x114   : > { %v645_v33 = vadd.f32 %v2126_v17, %v644_v29  ;;  %v805_v34 = vadd.f32 %v2126_v17, %v804_v30  ;;  %v952_v35 = vadd.f32 %v951_v27, %v889_v25  ;;  %v989_v36 = vadd.f32 %v988_v28, %v921_v26 }
 0x115   : > { %v1671_v39 = vpop.f32.mrf.mxu0  ;;  %v1719_v40 = vpop.f32.mrf.mxu1  ;;  %v892_v51 = vmax.f32 %v650_v37, 0.0  ;;  %v924_v52 = vmax.f32 %v810_v38, 0.0 }
 0x116   : > { %v891_v41 = vmax.f32 %v645_v33, 0.0  ;;  %v923_v42 = vmax.f32 %v805_v34, 0.0  ;;  %v953_v43 = vadd.f32 %v952_v35, %v890_v31  ;;  %v990_v44 = vadd.f32 %v989_v36, %v922_v32 }
 0x117   : > { %v654_v45 = vpop.f32.mrf.mxu0  ;;  %v814_v46 = vpop.f32.mrf.mxu1  ;;  %v660_v47 = vadd.f32 %v1671_v39, %v2126_v17  ;;  %v820_v48 = vadd.f32 %v1719_v40, %v2126_v17 }
 0x118   : > { %v655_v49 = vadd.f32 %v2126_v17, %v654_v45  ;;  %v815_v50 = vadd.f32 %v2126_v17, %v814_v46  ;;  %v954_v53 = vadd.f32 %v953_v43, %v891_v41  ;;  %v991_v54 = vadd.f32 %v990_v44, %v923_v42 }
 0x119   : > { %v1674_v55 = vpop.f32.mrf.mxu0  ;;  %v1722_v56 = vpop.f32.mrf.mxu1  ;;  %v894_v63 = vmax.f32 %v660_v47, 0.0  ;;  %v926_v0 = vmax.f32 %v820_v48, 0.0 }
 0x11a   : > { %v893_v57 = vmax.f32 %v655_v49, 0.0  ;;  %v925_v58 = vmax.f32 %v815_v50, 0.0  ;;  %v955_v59 = vadd.f32 %v954_v53, %v892_v51  ;;  %v992_v60 = vadd.f32 %v991_v54, %v924_v52 }
 0x11b   : > { %v664_v61 = vpop.f32.mrf.mxu0  ;;  %v824_v62 = vpop.f32.mrf.mxu1  ;;  %v670_v5 = vadd.f32 %v1674_v55, %v2126_v17  ;;  %v830_v6 = vadd.f32 %v1722_v56, %v2126_v17 }
 0x11c   : > { %v665_v1 = vadd.f32 %v2126_v17, %v664_v61  ;;  %v825_v2 = vadd.f32 %v2126_v17, %v824_v62  ;;  %v956_v3 = vadd.f32 %v955_v59, %v893_v57  ;;  %v993_v4 = vadd.f32 %v992_v60, %v925_v58 }
 0x11d   : > { %v1677_v7 = vpop.f32.mrf.mxu0  ;;  %v1725_v8 = vpop.f32.mrf.mxu1  ;;  %v896_v20 = vmax.f32 %v670_v5, 0.0  ;;  %v928_v21 = vmax.f32 %v830_v6, 0.0 }
 0x11e   : > { %v895_v9 = vmax.f32 %v665_v1, 0.0  ;;  %v927_v10 = vmax.f32 %v825_v2, 0.0  ;;  %v957_v11 = vadd.f32 %v956_v3, %v894_v63  ;;  %v994_v12 = vadd.f32 %v993_v4, %v926_v0 }
 0x11f   : > { %v674_v13 = vpop.f32.mrf.mxu0  ;;  %v834_v14 = vpop.f32.mrf.mxu1  ;;  %v680_v15 = vadd.f32 %v1677_v7, %v2126_v17  ;;  %v840_v16 = vadd.f32 %v1725_v8, %v2126_v17 }
 0x120   : > { %v675_v18 = vadd.f32 %v2126_v17, %v674_v13  ;;  %v835_v19 = vadd.f32 %v2126_v17, %v834_v14  ;;  %v958_v22 = vadd.f32 %v957_v11, %v895_v9  ;;  %v995_v23 = vadd.f32 %v994_v12, %v927_v10 }
 0x121   : > { %v1680_v24 = vpop.f32.mrf.mxu0  ;;  %v1728_v25 = vpop.f32.mrf.mxu1  ;;  %v898_v32 = vmax.f32 %v680_v15, 0.0  ;;  %v930_v33 = vmax.f32 %v840_v16, 0.0 }
 0x122   : > { %v897_v26 = vmax.f32 %v675_v18, 0.0  ;;  %v929_v27 = vmax.f32 %v835_v19, 0.0  ;;  %v959_v28 = vadd.f32 %v958_v22, %v896_v20  ;;  %v996_v29 = vadd.f32 %v995_v23, %v928_v21 }
 0x123   : > { %v684_v30 = vpop.f32.mrf.mxu0  ;;  %v844_v31 = vpop.f32.mrf.mxu1  ;;  %v690_v38 = vadd.f32 %v1680_v24, %v2126_v17  ;;  %v850_v39 = vadd.f32 %v1728_v25, %v2126_v17 }
 0x124   : > { %v685_v34 = vadd.f32 %v2126_v17, %v684_v30  ;;  %v845_v35 = vadd.f32 %v2126_v17, %v844_v31  ;;  %v960_v36 = vadd.f32 %v959_v28, %v897_v26  ;;  %v997_v37 = vadd.f32 %v996_v29, %v929_v27 }
 0x125   : > { %v1683_v40 = vpop.f32.mrf.mxu0  ;;  %v1731_v41 = vpop.f32.mrf.mxu1  ;;  %v900_v52 = vmax.f32 %v690_v38, 0.0  ;;  %v932_v53 = vmax.f32 %v850_v39, 0.0 }
 0x126   : > { %v899_v42 = vmax.f32 %v685_v34, 0.0  ;;  %v931_v43 = vmax.f32 %v845_v35, 0.0  ;;  %v961_v44 = vadd.f32 %v960_v36, %v898_v32  ;;  %v998_v45 = vadd.f32 %v997_v37, %v930_v33 }
 0x127   : > { %v694_v46 = vpop.f32.mrf.mxu0  ;;  %v854_v47 = vpop.f32.mrf.mxu1  ;;  %v700_v48 = vadd.f32 %v1683_v40, %v2126_v17  ;;  %v860_v49 = vadd.f32 %v1731_v41, %v2126_v17 }
 0x128   : > { %v695_v50 = vadd.f32 %v2126_v17, %v694_v46  ;;  %v855_v51 = vadd.f32 %v2126_v17, %v854_v47  ;;  %v962_v54 = vadd.f32 %v961_v44, %v899_v42  ;;  %v999_v55 = vadd.f32 %v998_v45, %v931_v43 }
 0x129   : > { %v1686_v56 = vpop.f32.mrf.mxu0  ;;  %v1734_v57 = vpop.f32.mrf.mxu1  ;;  %v902_v0 = vmax.f32 %v700_v48, 0.0  ;;  %v934_v1 = vmax.f32 %v860_v49, 0.0 }
 0x12a   : > { %v901_v58 = vmax.f32 %v695_v50, 0.0  ;;  %v933_v59 = vmax.f32 %v855_v51, 0.0  ;;  %v963_v60 = vadd.f32 %v962_v54, %v900_v52  ;;  %v1000_v61 = vadd.f32 %v999_v55, %v932_v53 }
 0x12b   : > { %v704_v62 = vpop.f32.mrf.mxu0  ;;  %v864_v63 = vpop.f32.mrf.mxu1  ;;  %v710_v6 = vadd.f32 %v1686_v56, %v2126_v17  ;;  %v870_v7 = vadd.f32 %v1734_v57, %v2126_v17 }
 0x12c   : > { %v705_v2 = vadd.f32 %v2126_v17, %v704_v62  ;;  %v865_v3 = vadd.f32 %v2126_v17, %v864_v63  ;;  %v964_v4 = vadd.f32 %v963_v60, %v901_v58  ;;  %v1001_v5 = vadd.f32 %v1000_v61, %v933_v59 }
 0x12d   : > { %v904_v12 = vmax.f32 %v710_v6, 0.0  ;;  %v936_v13 = vmax.f32 %v870_v7, 0.0 }
 0x12e   : > { %v903_v8 = vmax.f32 %v705_v2, 0.0  ;;  %v935_v9 = vmax.f32 %v865_v3, 0.0  ;;  %v965_v10 = vadd.f32 %v964_v4, %v902_v0  ;;  %v1002_v11 = vadd.f32 %v1001_v5, %v934_v1 }
 0x130   : > { %v966_v14 = vadd.f32 %v965_v10, %v903_v8  ;;  %v1003_v15 = vadd.f32 %v1002_v11, %v935_v9 }
 0x132   : > { %v967_v16 = vadd.f32 %v966_v14, %v904_v12  ;;  %v1004_v18 = vadd.f32 %v1003_v15, %v936_v13 }
 0x134   : > { %v968_v19 = vrot.slane %v967_v16, 4  ;;  %v1005_v20 = vrot.slane %v1004_v18, 4 }
 0x136   : > { %v969_v21 = vadd.f32 %v968_v19, %v967_v16  ;;  %v1006_v22 = vadd.f32 %v1005_v20, %v1004_v18 }
 0x138   : > { %v970_v23 = vrot.slane %v969_v21, 2  ;;  %v1007_v24 = vrot.slane %v1006_v22, 2 }
 0x13a   : > { %v971_v25 = vadd.f32 %v970_v23, %v969_v21  ;;  %v1008_v26 = vadd.f32 %v1007_v24, %v1006_v22 }
 0x13c   : > { %v972_v17 = vrot.slane %v971_v25, 1  ;;  %v1009_v27 = vrot.slane %v1008_v26, 1 }
 0x13e   : > { %v973_v28 = vadd.f32 %v972_v17, %v971_v25  ;;  %v1010_v29 = vadd.f32 %v1009_v27, %v1008_v26 }
 0x13f   : > { %1020 = sbr.rel (%p1452_p4) target bundleno = 946 (0x3b2), region = 72 }
 0x140   : > { %v1012_v30 = vsel %vm1011_vm0, %v973_v28, %v1010_v29 }
 0x141   : > { %v1013_v31 = vmul.f32 0.00390625, %v1012_v30 }
 0x143   : > { %1016 = vst [vmem:[%s1015_s13] sm:$0x3] %v1013_v31 }
 0x144   : > { %v1146_v32 = vld [vmem:[%s2494_s4 + $0x78] sm:$0xff]  ;;  %v1927_v33 = vmov 0.0   ;;  %v1145_v34 = vld [vmem:[%s2494_s4 + $0x70] sm:$0xff]  ;;  %vm1928_vm1 = vmmov 0   ;;  %v1929_v35 = vmov 0   ;;  %v1144_v36 = vld [vmem:[%s2494_s4 + $0x68] sm:$0xff] }
 0x145   : > { %1770 = vmatprep.subr.mxu1 %v1927_v33  ;;  %1802 = vmatprep.mubr.msk.f32.mxu1 %vm1928_vm1, %v1927_v33  ;;  %v1143_v37 = vld [vmem:[%s2494_s4 + $0x60] sm:$0xff]  ;;  %v1060_v40 = vld [vmem:[%s2501_s11 + $0x78] sm:$0xff]  ;;  %v1059_v41 = vld [vmem:[%s2501_s11 + $0x70] sm:$0xff]  ;;  %vm1411_vm2 = vcmask 1041408  }
 0x146   : > { %1771 = vmatpush3.msra.mxu1 %v1146_v32  ;;  %1918 = vset.pattern.permute.xlu0 %v1929_v35  ;;  %v1022_v39 = vld [vmem:[%s2491_s1] sm:$0x3]  ;;  %v1142_v42 = vld [vmem:[%s2494_s4 + $0x58] sm:$0xff]  ;;  %v1058_v43 = vld [vmem:[%s2501_s11 + $0x68] sm:$0xff] }
 0x147   : > { %1772 = vmatprep.subr.mxu1 %v1927_v33  ;;  %1735 = vmatprep.subr.mxu0 %v1927_v33  ;;  %v1141_v44 = vld [vmem:[%s2494_s4 + $0x50] sm:$0xff]  ;;  %v1057_v45 = vld [vmem:[%s2501_s11 + $0x60] sm:$0xff]  ;;  %v1140_v46 = vld [vmem:[%s2494_s4 + $0x48] sm:$0xff] }
 0x148   : > { %1773 = vmatpush3.msra.mxu1 %v1145_v34  ;;  %1767 = vmatprep.mubr.msk.f32.mxu0 %vm1928_vm1, %v1927_v33  ;;  %v1056_v47 = vld [vmem:[%s2501_s11 + $0x58] sm:$0xff]  ;;  %v1139_v48 = vld [vmem:[%s2494_s4 + $0x40] sm:$0xff]  ;;  %v1055_v49 = vld [vmem:[%s2501_s11 + $0x50] sm:$0xff] }
 0x149   : > { %1774 = vmatprep.subr.mxu1 %v1927_v33  ;;  %1026 = vperm.xlu0 %1918, %v1022_v39   ;;  %v1138_v50 = vld [vmem:[%s2494_s4 + $0x38] sm:$0xff]  ;;  %v1054_v51 = vld [vmem:[%s2501_s11 + $0x48] sm:$0xff]  ;;  %v1137_v52 = vld [vmem:[%s2494_s4 + $0x30] sm:$0xff] }
 0x14a   : > { %v2214_v38 = vld [vmem:[#allocation2] sm:$0xf]  ;;  %1775 = vmatpush3.msra.mxu1 %v1144_v36  ;;  %1736 = vmatpush3.msra.mxu0 %v1060_v40  ;;  %v1136_v54 = vld [vmem:[%s2494_s4 + $0x28] sm:$0xff]  ;;  %v1052_v55 = vld [vmem:[%s2501_s11 + $0x38] sm:$0xff] }
 0x14b   : > { %1406 = vst [vmem:[%s2502_s12 + $0x4] sm:$0xf] %v2214_v38  ;;  %1776 = vmatprep.subr.mxu1 %v1927_v33  ;;  %1737 = vmatprep.subr.mxu0 %v1927_v33  ;;  %v1053_v53 = vld [vmem:[%s2501_s11 + $0x40] sm:$0xff]  ;;  %v1051_v57 = vld [vmem:[%s2501_s11 + $0x30] sm:$0xff]  ;;  %v1134_v58 = vld [vmem:[%s2494_s4 + $0x18] sm:$0xff] }
 0x14c   : > { %1777 = vmatpush3.msra.mxu1 %v1143_v37  ;;  %1738 = vmatpush3.msra.mxu0 %v1059_v41  ;;  %v1135_v56 = vld [vmem:[%s2494_s4 + $0x20] sm:$0xff]  ;;  %v1050_v59 = vld [vmem:[%s2501_s11 + $0x28] sm:$0xff]  ;;  %v1133_v60 = vld [vmem:[%s2494_s4 + $0x10] sm:$0xff] }
 0x14d   : > { %1778 = vmatprep.subr.mxu1 %v1927_v33  ;;  %1739 = vmatprep.subr.mxu0 %v1927_v33  ;;  %v1049_v61 = vld [vmem:[%s2501_s11 + $0x20] sm:$0xff]  ;;  %v1132_v62 = vld [vmem:[%s2494_s4 + $0x8] sm:$0xff]  ;;  %v1048_v63 = vld [vmem:[%s2501_s11 + $0x18] sm:$0xff] }
 0x14e   : > { %1779 = vmatpush3.msra.mxu1 %v1142_v42  ;;  %1740 = vmatpush3.msra.mxu0 %v1058_v43  ;;  %v1131_v0 = vld [vmem:[%s2494_s4] sm:$0xff]  ;;  %v1047_v1 = vld [vmem:[%s2501_s11 + $0x10] sm:$0xff]  ;;  %v1046_v2 = vld [vmem:[%s2501_s11 + $0x8] sm:$0xff] }
 0x14f   : > { %1780 = vmatprep.subr.mxu1 %v1927_v33  ;;  %1741 = vmatprep.subr.mxu0 %v1927_v33  ;;  %v1045_v3 = vld [vmem:[%s2501_s11] sm:$0xff]  ;;  %v1240_v10 = vld [vmem:[%s2496_s6 + $0x78] sm:$0xff]  ;;  %v1239_v11 = vld [vmem:[%s2496_s6 + $0x70] sm:$0xff] }
 0x150   : > { %1781 = vmatpush3.msra.mxu1 %v1141_v44  ;;  %1742 = vmatpush3.msra.mxu0 %v1057_v45  ;;  %v1453_v4 = vld [vmem:[%s2499_s9] ss:$0 sm:$0xff]  ;;  %v1238_v12 = vld [vmem:[%s2496_s6 + $0x68] sm:$0xff]  ;;  %v1236_v14 = vld [vmem:[%s2496_s6 + $0x58] sm:$0xff] }
 0x151   : > { %1782 = vmatprep.subr.mxu1 %v1927_v33  ;;  %1743 = vmatprep.subr.mxu0 %v1927_v33  ;;  %v1454_v5 = vld [vmem:[%s2500_s10] ss:$0 sm:$0xff]  ;;  %v1235_v15 = vld [vmem:[%s2496_s6 + $0x50] sm:$0xff]  ;;  %v1234_v16 = vld [vmem:[%s2496_s6 + $0x48] sm:$0xff] }
 0x152   : > { %1783 = vmatpush3.msra.mxu1 %v1140_v46  ;;  %1744 = vmatpush3.msra.mxu0 %v1056_v47  ;;  %v1237_v13 = vld [vmem:[%s2496_s6 + $0x60] sm:$0xff]  ;;  %v1232_v19 = vld [vmem:[%s2496_s6 + $0x38] sm:$0xff]  ;;  %v1231_v20 = vld [vmem:[%s2496_s6 + $0x30] sm:$0xff] }
 0x153   : > { %1784 = vmatprep.subr.mxu1 %v1927_v33  ;;  %1745 = vmatprep.subr.mxu0 %v1927_v33  ;;  %v1233_v18 = vld [vmem:[%s2496_s6 + $0x40] sm:$0xff]  ;;  %v1230_v21 = vld [vmem:[%s2496_s6 + $0x28] sm:$0xff]  ;;  %v1228_v23 = vld [vmem:[%s2496_s6 + $0x18] sm:$0xff] }
 0x154   : > { %1785 = vmatpush3.msra.mxu1 %v1139_v48  ;;  %1746 = vmatpush3.msra.mxu0 %v1055_v49  ;;  %v1229_v22 = vld [vmem:[%s2496_s6 + $0x20] sm:$0xff]  ;;  %v1227_v24 = vld [vmem:[%s2496_s6 + $0x10] sm:$0xff]  ;;  %v1226_v25 = vld [vmem:[%s2496_s6 + $0x8] sm:$0xff] }
 0x155   : > { %1786 = vmatprep.subr.mxu1 %v1927_v33  ;;  %1747 = vmatprep.subr.mxu0 %v1927_v33  ;;  %v1225_v26 = vld [vmem:[%s2496_s6] sm:$0xff]  ;;  %v1334_v17 = vld [vmem:[%s2498_s8 + $0x78] sm:$0xff]  ;;  %v1333_v27 = vld [vmem:[%s2498_s8 + $0x70] sm:$0xff] }
 0x156   : > { %1787 = vmatpush3.msra.mxu1 %v1138_v50  ;;  %1748 = vmatpush3.msra.mxu0 %v1054_v51  ;;  %v1332_v28 = vld [vmem:[%s2498_s8 + $0x68] sm:$0xff]  ;;  %v1331_v29 = vld [vmem:[%s2498_s8 + $0x60] sm:$0xff]  ;;  %v1330_v30 = vld [vmem:[%s2498_s8 + $0x58] sm:$0xff] }
 0x157   : > { %1788 = vmatprep.subr.mxu1 %v1927_v33  ;;  %1749 = vmatprep.subr.mxu0 %v1927_v33  ;;  %v1329_v31 = vld [vmem:[%s2498_s8 + $0x50] sm:$0xff]  ;;  %v1328_v32 = vld [vmem:[%s2498_s8 + $0x48] sm:$0xff]  ;;  %v1327_v34 = vld [vmem:[%s2498_s8 + $0x40] sm:$0xff] }
 0x158   : > { %1789 = vmatpush3.msra.mxu1 %v1137_v52  ;;  %1750 = vmatpush3.msra.mxu0 %v1053_v53  ;;  %v1326_v35 = vld [vmem:[%s2498_s8 + $0x38] sm:$0xff]  ;;  %v1325_v36 = vld [vmem:[%s2498_s8 + $0x30] sm:$0xff]  ;;  %v1324_v37 = vld [vmem:[%s2498_s8 + $0x28] sm:$0xff] }
 0x159   : > { %1790 = vmatprep.subr.mxu1 %v1927_v33  ;;  %1751 = vmatprep.subr.mxu0 %v1927_v33  ;;  %v1455_v39 = vld [vmem:[%s2495_s5] ss:$0 sm:$0xff]  ;;  %v1322_v43 = vld [vmem:[%s2498_s8 + $0x18] sm:$0xff]  ;;  %v1321_v46 = vld [vmem:[%s2498_s8 + $0x10] sm:$0xff] }
 0x15a   : > { %1791 = vmatpush3.msra.mxu1 %v1136_v54  ;;  %1752 = vmatpush3.msra.mxu0 %v1052_v55  ;;  %v1323_v40 = vld [vmem:[%s2498_s8 + $0x20] sm:$0xff]  ;;  %v1320_v47 = vld [vmem:[%s2498_s8 + $0x8] sm:$0xff] }
 0x15b   : > { %1792 = vmatprep.subr.mxu1 %v1927_v33  ;;  %1753 = vmatprep.subr.mxu0 %v1927_v33  ;;  %v1319_v48 = vld [vmem:[%s2498_s8] sm:$0xff] }
 0x15c   : > { %1793 = vmatpush3.msra.mxu1 %v1135_v56  ;;  %1754 = vmatpush3.msra.mxu0 %v1051_v57 }
 0x15d   : > { %1794 = vmatprep.subr.mxu1 %v1927_v33  ;;  %1755 = vmatprep.subr.mxu0 %v1927_v33 }
 0x15e   : > { %1795 = vmatpush3.msra.mxu1 %v1134_v58  ;;  %1756 = vmatpush3.msra.mxu0 %v1050_v59 }
 0x15f   : > { %1796 = vmatprep.subr.mxu1 %v1927_v33  ;;  %1757 = vmatprep.subr.mxu0 %v1927_v33 }
 0x160   : > { %1797 = vmatpush3.msra.mxu1 %v1133_v60  ;;  %1758 = vmatpush3.msra.mxu0 %v1049_v61 }
 0x161   : > { %1798 = vmatprep.subr.mxu1 %v1927_v33  ;;  %1759 = vmatprep.subr.mxu0 %v1927_v33 }
 0x162   : > { %1799 = vmatpush3.msra.mxu1 %v1132_v62  ;;  %1760 = vmatpush3.msra.mxu0 %v1048_v63 }
 0x163   : > { %1800 = vmatprep.subr.mxu1 %v1927_v33  ;;  %1761 = vmatprep.subr.mxu0 %v1927_v33 }
 0x164   : > { %1801 = vmatpush3.msra.mxu1 %v1131_v0  ;;  %1762 = vmatpush3.msra.mxu0 %v1047_v1 }
 0x165   : > { %1803 = vmatmul.mubr.f32.vlgmr.msra.gmra.mxu1 %v2214_v38  ;;  %1763 = vmatprep.subr.mxu0 %v1927_v33 }
 0x166   : > { %1840 = vmatprep.subr.mxu1 %v1927_v33  ;;  %1764 = vmatpush3.msra.mxu0 %v1046_v2 }
 0x167   : > { %1872 = vmatprep.mubr.msk.f32.mxu1 %vm1928_vm1, %v1927_v33  ;;  %1765 = vmatprep.subr.mxu0 %v1927_v33 }
 0x168   : > { %1766 = vmatpush3.msra.mxu0 %v1045_v3  ;;  %1841 = vmatpush3.msra.mxu1 %v1334_v17 }
 0x169   : > { %1805 = vmatprep.subr.mxu0 %v1927_v33  ;;  %1842 = vmatprep.subr.mxu1 %v1927_v33 }
 0x16a   : > { %1843 = vmatpush3.msra.mxu1 %v1333_v27 }
 0x16b   : > { %1844 = vmatprep.subr.mxu1 %v1927_v33 }
 0x16c   : > { %1845 = vmatpush3.msra.mxu1 %v1332_v28 }
 0x16d   : > { %1846 = vmatprep.subr.mxu1 %v1927_v33 }
 0x16e   : > { %1847 = vmatpush3.msra.mxu1 %v1331_v29 }
 0x16f   : > { %1848 = vmatprep.subr.mxu1 %v1927_v33 }
 0x170   : > { %1849 = vmatpush3.msra.mxu1 %v1330_v30 }
 0x171   : > { %1850 = vmatprep.subr.mxu1 %v1927_v33 }
 0x172   : > { %1851 = vmatpush3.msra.mxu1 %v1329_v31 }
 0x173   : > { %1852 = vmatprep.subr.mxu1 %v1927_v33 }
 0x174   : > { %1853 = vmatpush3.msra.mxu1 %v1328_v32 }
 0x175   : > { %1854 = vmatprep.subr.mxu1 %v1927_v33 }
 0x176   : > { %1855 = vmatpush3.msra.mxu1 %v1327_v34 }
 0x177   : > { %1856 = vmatprep.subr.mxu1 %v1927_v33 }
 0x178   : > { %1857 = vmatpush3.msra.mxu1 %v1326_v35 }
 0x179   : > { %1858 = vmatprep.subr.mxu1 %v1927_v33 }
 0x17a   : > { %1859 = vmatpush3.msra.mxu1 %v1325_v36 }
 0x17b   : > { %1860 = vmatprep.subr.mxu1 %v1927_v33 }
 0x17c   : > { %1861 = vmatpush3.msra.mxu1 %v1324_v37 }
 0x17d   : > { %1862 = vmatprep.subr.mxu1 %v1927_v33 }
 0x17e   : > { %1863 = vmatpush3.msra.mxu1 %v1323_v40 }
 0x17f   : > { %1864 = vmatprep.subr.mxu1 %v1927_v33 }
 0x180   : > { %1865 = vmatpush3.msra.mxu1 %v1322_v43 }
 0x181   : > { %1866 = vmatprep.subr.mxu1 %v1927_v33 }
 0x182   : > { %1867 = vmatpush3.msra.mxu1 %v1321_v46 }
 0x183   : > { %1868 = vmatprep.subr.mxu1 %v1927_v33 }
 0x184   : > { %1869 = vmatpush3.msra.mxu1 %v1320_v47 }
 0x185   : > { %1870 = vmatprep.subr.mxu1 %v1927_v33 }
 0x186   : > { %1871 = vmatpush3.msra.mxu1 %v1319_v48 }
 0x1c4   : > { %v1027_v6 = vpop.permute.xlu0 %1026 }
 0x1c5   : > { %v1035_v7 = vmul.f32 %v1453_v4, %v1027_v6 }
 0x1c7   : > { %v1043_v8 = vadd.f32 %v1454_v5, %v1035_v7 }
 0x1c9   : > { %v1044_v9 = vmax.f32 %v1043_v8, 0.0 }
 0x1cb   : > { %1768 = vmatmul.mubr.f32.vlgmr.msra.gmra.mxu0 %v1044_v9 }
 0x1cc   : > { %1806 = vmatpush3.msra.mxu0 %v1240_v10  ;;  %1837 = vmatprep.mubr.msk.f32.mxu0 %vm1928_vm1, %v1927_v33 }
 0x1cd   : > { %1807 = vmatprep.subr.mxu0 %v1927_v33 }
 0x1ce   : > { %1808 = vmatpush3.msra.mxu0 %v1239_v11 }
 0x1cf   : > { %1809 = vmatprep.subr.mxu0 %v1927_v33 }
 0x1d0   : > { %1810 = vmatpush3.msra.mxu0 %v1238_v12 }
 0x1d1   : > { %1811 = vmatprep.subr.mxu0 %v1927_v33 }
 0x1d2   : > { %1812 = vmatpush3.msra.mxu0 %v1237_v13 }
 0x1d3   : > { %1813 = vmatprep.subr.mxu0 %v1927_v33 }
 0x1d4   : > { %1814 = vmatpush3.msra.mxu0 %v1236_v14 }
 0x1d5   : > { %1815 = vmatprep.subr.mxu0 %v1927_v33 }
 0x1d6   : > { %1816 = vmatpush3.msra.mxu0 %v1235_v15 }
 0x1d7   : > { %1817 = vmatprep.subr.mxu0 %v1927_v33 }
 0x1d8   : > { %1818 = vmatpush3.msra.mxu0 %v1234_v16 }
 0x1d9   : > { %1819 = vmatprep.subr.mxu0 %v1927_v33 }
 0x1da   : > { %1820 = vmatpush3.msra.mxu0 %v1233_v18 }
 0x1db   : > { %1821 = vmatprep.subr.mxu0 %v1927_v33 }
 0x1dc   : > { %1822 = vmatpush3.msra.mxu0 %v1232_v19 }
 0x1dd   : > { %1823 = vmatprep.subr.mxu0 %v1927_v33 }
 0x1de   : > { %1824 = vmatpush3.msra.mxu0 %v1231_v20 }
 0x1df   : > { %1825 = vmatprep.subr.mxu0 %v1927_v33 }
 0x1e0   : > { %1826 = vmatpush3.msra.mxu0 %v1230_v21 }
 0x1e1   : > { %1827 = vmatprep.subr.mxu0 %v1927_v33 }
 0x1e2   : > { %1828 = vmatpush3.msra.mxu0 %v1229_v22 }
 0x1e3   : > { %1829 = vmatprep.subr.mxu0 %v1927_v33 }
 0x1e4   : > { %1830 = vmatpush3.msra.mxu0 %v1228_v23 }
 0x1e5   : > { %1831 = vmatprep.subr.mxu0 %v1927_v33 }
 0x1e6   : > { %1832 = vmatpush3.msra.mxu0 %v1227_v24 }
 0x1e7   : > { %1833 = vmatprep.subr.mxu0 %v1927_v33 }
 0x1e8   : > { %1834 = vmatpush3.msra.mxu0 %v1226_v25 }
 0x1e9   : > { %1835 = vmatprep.subr.mxu0 %v1927_v33  ;;  %v1456_v33 = vld [vmem:[%s2497_s7] ss:$0 sm:$0xff] }
 0x1ea   : > { %1836 = vmatpush3.msra.mxu0 %v1225_v26 }
 0x225   : > { %v1220_v41 = vpop.f32.mrf.mxu1 }
 0x226   : > { %v1221_v42 = vadd.f32 %v1455_v39, %v1220_v41 }
 0x227   : > { %v1804_v44 = vpop.f32.mrf.mxu1 }
 0x228   : > { %v1224_v45 = vmax.f32 %v1221_v42, 0.0 }
 0x22a   : > { %1838 = vmatmul.mubr.f32.vlgmr.msra.gmra.mxu0 %v1224_v45 }
 0x28b   : > { %v1127_v49 = vpop.f32.mrf.mxu0 }
 0x28c   : > { %v1407_v50 = vadd.f32 %v1127_v49, %v2214_v38  ;;  %v1409_v51 = vrot.slane %v1127_v49, 6 }
 0x28d   : > { %v1769_v52 = vpop.f32.mrf.mxu0 }
 0x28e   : > { %v1412_v53 = vsel %vm1411_vm2, %v1407_v50, %v1409_v51 }
 0x28f   : > { %1413 = vst [vmem:[%s2502_s12 + $0x8] sm:$0xf] %v1412_v53 }
 0x2ea   : > { %v1314_v54 = vpop.f32.mrf.mxu0 }
 0x2eb   : > { %v1315_v55 = vadd.f32 %v1456_v33, %v1314_v54 }
 0x2ec   : > { %v1839_v56 = vpop.f32.mrf.mxu0 }
 0x2ed   : > { %v1318_v57 = vmax.f32 %v1315_v55, 0.0 }
 0x2ef   : > { %1873 = vmatmul.mubr.f32.vlgmr.msra.gmra.mxu1 %v1318_v57 }
 0x3af   : > { %v1401_v58 = vpop.f32.mrf.mxu1 }
 0x3b0   : > { %1405 = vst [vmem:[%s2502_s12] sm:$0xf] %v1401_v58 }
 0x3b1   : > { %v1874_v38 = vpop.f32.mrf.mxu1 }
 0x3b2 PF: > { %s22_s21 = sadd.s32 1, %s1925_s21  }
 0x3b3   : > { %p19_p5 = scmp.ge.s32.totalorder %s22_s21, 4  }
 0x3b5   :  { %21 = sbr.rel (!%p19_p5) target bundleno = 1 (0x1), region = 99 }

</bundles_post_ra>
